<compile_context>
chip_gen: v7x
topology: tpu7x:2x2x1
jax: 0.10.0
libtpu: 0.0.40
codegen_flags: <defaults>
</compile_context>

<pallas_src>
import numpy as np
import jax
import jax.numpy as jnp
from jax.experimental import pallas as pl
from jax.experimental.pallas import tpu as pltpu

# ---- synthetic config (mirrors agent_rl `config` constants, small sizes) ----
BAG_SIZE = 32     # config.BAG_SIZE
CLASSES  = 4      # config.CLASSES
FEAT_LEN = 24     # meta.feat_idx[-1][1]
FEAT_CNT = 8      # len(meta.feat_idx)
BN_EPS   = 1e-5   # torch.nn.BatchNorm1d default eps

HEAD_W = FEAT_CNT + 1 + 1 + CLASSES    # fused head width: [out | a | v | cls_p] = 14
A_COL  = FEAT_CNT                      # column of o_cls_a (8)
V_COL  = FEAT_CNT + 1                  # column of o_v     (9)
P_COL  = FEAT_CNT + 2                  # first column of o_cls_p (10)

ACT_DTYPE = jnp.bfloat16               # activation feed dtype (HBM traffic)
MAX_TILE  = 8192                       # row tile upper bound (fits every chip's VMEM)


def _round_up(x, m):
    return ((x + m - 1) // m) * m


def _choose_tile(n):
    """Row tile: multiple of 8, <= MAX_TILE, minimal padding."""
    n8 = _round_up(n, 8)
    if n8 <= MAX_TILE:
        return n8
    n_tiles = -(-n8 // MAX_TILE)
    return _round_up(-(-n8 // n_tiles), 8)


# ----------------------------------------------------------------------------
# Pass 1: accumulate sum(h) and sum(h^2) over the batch (BN statistics).
# ----------------------------------------------------------------------------
def make_stats_kernel(tile, n_valid, n_pad):
    need_row_mask = (n_pad != n_valid)

    def stats_kernel(feats_ref, mask_ref, wf_ref, wm_ref, bias_ref, out_ref):
        i = pl.program_id(0)

        @pl.when(i == 0)
        def _():
            out_ref[...] = jnp.zeros_like(out_ref)

        feats = feats_ref[...].astype(jnp.float32)
        msk = mask_ref[...].astype(jnp.float32)
        h = jnp.dot(feats, wf_ref[...], preferred_element_type=jnp.float32)
        h = h + jnp.dot(msk, wm_ref[...], preferred_element_type=jnp.float32)
        h = jnp.maximum(h + bias_ref[0:1, :], 0.0)          # ReLU(Linear(feats||mask))

        if need_row_mask:  # zero padded rows so they don't pollute the stats
            row = i * tile + jax.lax.broadcasted_iota(jnp.int32, (tile, 1), 0)
            h = jnp.where(row < n_valid, h, 0.0)

        out_ref[0:1, :] = out_ref[0:1, :] + jnp.sum(h, axis=0, keepdims=True)
        out_ref[1:2, :] = out_ref[1:2, :] + jnp.sum(h * h, axis=0, keepdims=True)

    return stats_kernel


# ----------------------------------------------------------------------------
# Pass 2: recompute h, apply folded BN (scale/shift) and the fused heads.
# ----------------------------------------------------------------------------
def apply_kernel(feats_ref, mask_ref, wf_ref, wm_ref, wh_ref, bias_ref,
                 stats_ref, out_ref):
    feats = feats_ref[...].astype(jnp.float32)
    msk = mask_ref[...].astype(jnp.float32)

    h = jnp.dot(feats, wf_ref[...], preferred_element_type=jnp.float32)
    h = h + jnp.dot(msk, wm_ref[...], preferred_element_type=jnp.float32)
    h = jnp.maximum(h + bias_ref[0:1, :], 0.0)

    # Folded BatchNorm: h * (gamma * rsqrt(var+eps)) + (beta - mu * scale)
    h = h * stats_ref[0:1, :] + stats_ref[1:2, :]

    # Fused heads, column order [out(0:8) | a(8) | v(9) | cls_p(10:14)]
    heads = (jnp.dot(h, wh_ref[...], preferred_element_type=jnp.float32)
             + bias_ref[1:2, :HEAD_W])

    # BagOutput block is lane-aligned with the mask -> pure VPU select.
    out_ref[:, :FEAT_CNT] = jnp.where(msk >= 1.0, -jnp.inf, heads[:, :FEAT_CNT])
    out_ref[:, FEAT_CNT:] = heads[:, FEAT_CNT:]
    # TODO(synk): output last-dim is 14 (<128) -> masked partial stores; pad to
    # 128 / transpose only if profiling shows the store slot (not HBM) binding.


# ----------------------------------------------------------------------------
# Wrapper
# ----------------------------------------------------------------------------
def net_forward(feats, mask, pp):
    """feats: (N, FEAT_LEN) f32, mask: (N, FEAT_CNT) f32, pp: pack_params(...)"""
    N = feats.shape[0]
    tile = _choose_tile(N)
    n_pad = _round_up(N, tile)
    grid = (n_pad // tile,)

    feats_b = feats.astype(ACT_DTYPE)
    mask_b = mask.astype(ACT_DTYPE)
    if n_pad != N:
        feats_b = jnp.pad(feats_b, ((0, n_pad - N), (0, 0)))
        mask_b = jnp.pad(mask_b, ((0, n_pad - N), (0, 0)))

    def full_spec(shape):
        return pl.BlockSpec(shape, lambda i: (0, 0))

    act_bytes = 2  # bf16
    in_act_bytes = n_pad * (FEAT_LEN + FEAT_CNT) * act_bytes
    param_bytes = (FEAT_LEN + FEAT_CNT + BAG_SIZE + 4) * BAG_SIZE * 4

    # ---- pass 1: BN statistics (skipped for batch size 1 -> running stats) ----
    if N > 1:
        stats_cost = pl.CostEstimate(
            flops=2 * n_pad * BAG_SIZE * (FEAT_LEN + FEAT_CNT) + 5 * n_pad * BAG_SIZE,
            transcendentals=0,
            bytes_accessed=in_act_bytes + param_bytes + 2 * BAG_SIZE * 4,
        )
        sums = pl.pallas_call(
            make_stats_kernel(tile, N, n_pad),
            grid=grid,
            in_specs=[
                pl.BlockSpec((tile, FEAT_LEN), lambda i: (i, 0)),
                pl.BlockSpec((tile, FEAT_CNT), lambda i: (i, 0)),
                full_spec((FEAT_LEN, BAG_SIZE)),
                full_spec((FEAT_CNT, BAG_SIZE)),
                full_spec((2, BAG_SIZE)),
            ],
            out_specs=pl.BlockSpec((2, BAG_SIZE), lambda i: (0, 0)),
            out_shape=jax.ShapeDtypeStruct((2, BAG_SIZE), jnp.float32),
            compiler_params=pltpu.CompilerParams(
                dimension_semantics=("arbitrary",)),
            cost_estimate=stats_cost,
        )(feats_b, mask_b, pp["w_in_f"], pp["w_in_m"], pp["bias"])

        mu = sums[0] / N
        var = jnp.maximum(sums[1] / N - mu * mu, 0.0)   # biased (training-mode) var
    else:
        # CustomBatchNorm: batch size 1 -> eval-mode running statistics.
        mu = pp["run_mean"][0]
        var = pp["run_var"][0]

    scale = pp["bn_g"][0] * jax.lax.rsqrt(var + BN_EPS)
    shift = pp["bn_b"][0] - mu * scale
    stats = jnp.stack([scale, shift]).astype(jnp.float32)     # (2, BAG_SIZE)

    # ---- pass 2: apply BN + fused heads (batch axis parallel -> both TCs) ----
    apply_cost = pl.CostEstimate(
        flops=2 * n_pad * BAG_SIZE * (FEAT_LEN + FEAT_CNT + HEAD_W) + 7 * n_pad * BAG_SIZE,
        transcendentals=0,
        bytes_accessed=in_act_bytes + param_bytes + n_pad * HEAD_W * 4,
    )
    out = pl.pallas_call(
        apply_kernel,
        grid=grid,
        in_specs=[
            pl.BlockSpec((tile, FEAT_LEN), lambda i: (i, 0)),
            pl.BlockSpec((tile, FEAT_CNT), lambda i: (i, 0)),
            full_spec((FEAT_LEN, BAG_SIZE)),
            full_spec((FEAT_CNT, BAG_SIZE)),
            full_spec((BAG_SIZE, HEAD_W)),
            full_spec((2, BAG_SIZE)),
            full_spec((2, BAG_SIZE)),
        ],
        out_specs=pl.BlockSpec((tile, HEAD_W), lambda i: (i, 0)),
        out_shape=jax.ShapeDtypeStruct((n_pad, HEAD_W), jnp.float32),
        compiler_params=pltpu.CompilerParams(
            dimension_semantics=("parallel",)),
        cost_estimate=apply_cost,
    )(feats_b, mask_b, pp["w_in_f"], pp["w_in_m"], pp["w_heads"], pp["bias"], stats)

    out = out[:N]
    o_v = out[:, V_COL:V_COL + 1]
    o_cls_p = out[:, P_COL:P_COL + CLASSES]
    # o_f = cat((o_cls_a, masked BagOutput logits), dim=1)
    o_f = jnp.concatenate([out[:, A_COL:A_COL + 1], out[:, :FEAT_CNT]], axis=1)
    return o_v, o_cls_p, o_f


# ----------------------------------------------------------------------------
# Parameters
# ----------------------------------------------------------------------------
def init_params(key):
    """Deterministic PyTorch-style Linear init (U(-1/sqrt(fan_in), 1/sqrt(fan_in)))."""
    ks = jax.random.split(key, 5)

    def linear(k, fan_in, fan_out):
        kw, kb = jax.random.split(k)
        bound = fan_in ** -0.5
        w = jax.random.uniform(kw, (fan_in, fan_out), jnp.float32, -bound, bound)
        b = jax.random.uniform(kb, (1, fan_out), jnp.float32, -bound, bound)
        return w, b

    w_in, b_in = linear(ks[0], FEAT_LEN + FEAT_CNT, BAG_SIZE)
    w_v, b_v = linear(ks[1], BAG_SIZE, 1)
    w_p, b_p = linear(ks[2], BAG_SIZE, CLASSES)
    w_a, b_a = linear(ks[3], BAG_SIZE, 1)
    w_out, b_out = linear(ks[4], BAG_SIZE, FEAT_CNT)
    return dict(
        w_in_f=w_in[:FEAT_LEN], w_in_m=w_in[FEAT_LEN:], b_in=b_in,
        bn_g=jnp.ones((1, BAG_SIZE), jnp.float32),        # BatchNorm1d: weight=1
        bn_b=jnp.zeros((1, BAG_SIZE), jnp.float32),       #              bias=0
        run_mean=jnp.zeros((1, BAG_SIZE), jnp.float32),   # running_mean=0
        run_var=jnp.ones((1, BAG_SIZE), jnp.float32),     # running_var=1
        w_v=w_v, b_v=b_v, w_p=w_p, b_p=b_p, w_a=w_a, b_a=b_a,
        w_out=w_out, b_out=b_out,
    )


def pack_params(p):
    """One-time packing of parameters into the kernel's fused layouts."""
    # fused heads, column order [out | a | v | cls_p]
    w_heads = jnp.concatenate([p["w_out"], p["w_a"], p["w_v"], p["w_p"]], axis=1)
    b_heads = jnp.concatenate([p["b_out"], p["b_a"], p["b_v"], p["b_p"]], axis=1)
    b_heads = jnp.pad(b_heads, ((0, 0), (0, BAG_SIZE - HEAD_W)))
    bias = jnp.concatenate([p["b_in"], b_heads], axis=0)        # (2, BAG_SIZE)
    return dict(
        w_in_f=p["w_in_f"], w_in_m=p["w_in_m"],
        w_heads=w_heads, bias=bias,
        bn_g=p["bn_g"], bn_b=p["bn_b"],
        run_mean=p["run_mean"], run_var=p["run_var"],
    )


# ----------------------------------------------------------------------------
# Pure-JAX reference mirroring the PyTorch forward (for correctness check)
# ----------------------------------------------------------------------------
def reference_forward(feats, mask, p):
    h = jnp.maximum(feats @ p["w_in_f"] + mask @ p["w_in_m"] + p["b_in"], 0.0)
    if feats.shape[0] > 1:
        mu = h.mean(axis=0, keepdims=True)
        var = ((h - mu) ** 2).mean(axis=0, keepdims=True)
    else:  # CustomBatchNorm eval path for batch size 1
        mu, var = p["run_mean"], p["run_var"]
    h = (h - mu) / jnp.sqrt(var + BN_EPS) * p["bn_g"] + p["bn_b"]
    o_v = h @ p["w_v"] + p["b_v"]
    o_p = h @ p["w_p"] + p["b_p"]
    o_a = h @ p["w_a"] + p["b_a"]
    o_out = h @ p["w_out"] + p["b_out"]
    o_out = jnp.where(mask >= 1.0, -jnp.inf, o_out)
    return o_v, o_p, jnp.concatenate([o_a, o_out], axis=1)


if __name__ == "__main__":
    key = jax.random.PRNGKey(0)
    k_f, k_m, k_p = jax.random.split(key, 3)

    N = 8  # batch of bag samples (> 1 -> CustomBatchNorm batch-stats path)
    feats = jax.random.normal(k_f, (N, FEAT_LEN), jnp.float32)                  # smp.feats
    mask = (jax.random.uniform(k_m, (N, FEAT_CNT)) > 0.5).astype(jnp.float32)   # smp.mask

    params = init_params(k_p)
    packed = pack_params(params)        # packed ONCE, outside the forward path

    fwd = jax.jit(net_forward)
    o_v, o_cls_p, o_f = fwd(feats, mask, packed)
    jax.block_until_ready((o_v, o_cls_p, o_f))

    # Reference on the same bf16-quantized activations the kernel consumes.
    feats_q = feats.astype(ACT_DTYPE).astype(jnp.float32)
    mask_q = mask.astype(ACT_DTYPE).astype(jnp.float32)
    r_v, r_p, r_f = reference_forward(feats_q, mask_q, params)
    assert np.allclose(np.asarray(o_v), np.asarray(r_v), rtol=1e-4, atol=1e-4)
    assert np.allclose(np.asarray(o_cls_p), np.asarray(r_p), rtol=1e-4, atol=1e-4)
    assert np.allclose(np.asarray(o_f), np.asarray(r_f), rtol=1e-4, atol=1e-4)

    # batch-size-1 path (CustomBatchNorm eval-mode running stats)
    o_v1, o_p1, o_f1 = fwd(feats[:1], mask[:1], packed)
    jax.block_until_ready((o_v1, o_p1, o_f1))
    r_v1, r_p1, r_f1 = reference_forward(feats_q[:1], mask_q[:1], params)
    assert np.allclose(np.asarray(o_v1), np.asarray(r_v1), rtol=1e-4, atol=1e-4)
    assert np.allclose(np.asarray(o_p1), np.asarray(r_p1), rtol=1e-4, atol=1e-4)
    assert np.allclose(np.asarray(o_f1), np.asarray(r_f1), rtol=1e-4, atol=1e-4)

    print("KERNEL_OK")
</pallas_src>

<mosaic_0001>
module attributes {stable_mosaic.version = 11 : i64} {
  func.func @stats_kernel(%arg0: i32, %arg1: memref<8x24xbf16, #tpu.memory_space<vmem>>, %arg2: memref<8x8xbf16, #tpu.memory_space<vmem>>, %arg3: memref<24x32xf32, #tpu.memory_space<vmem>>, %arg4: memref<8x32xf32, #tpu.memory_space<vmem>>, %arg5: memref<2x32xf32, #tpu.memory_space<vmem>>, %arg6: memref<2x32xf32, #tpu.memory_space<vmem>>) attributes {dimension_semantics = [#tpu.dimension_semantics<arbitrary>], iteration_bounds = array<i64: 1>, scalar_prefetch = 0 : i64, scratch_operands = 0 : i64, tpu.core_type = #tpu.core_type<tc>, window_params = [{transform_indices = @transform_0, window_bounds = array<i64: 8, 24>}, {transform_indices = @transform_1, window_bounds = array<i64: 8, 8>}, {pipeline_mode = #tpu.pipeline_mode<synchronous>, transform_indices = @transform_2, window_bounds = array<i64: 24, 32>}, {pipeline_mode = #tpu.pipeline_mode<synchronous>, transform_indices = @transform_3, window_bounds = array<i64: 8, 32>}, {pipeline_mode = #tpu.pipeline_mode<synchronous>, transform_indices = @transform_4, window_bounds = array<i64: 2, 32>}, {pipeline_mode = #tpu.pipeline_mode<synchronous>, transform_indices = @transform_5, window_bounds = array<i64: 2, 32>}]} {
    %c0_i32 = arith.constant 0 : i32
    %0 = arith.cmpi eq, %arg0, %c0_i32 : i32
    %1 = arith.extui %0 : i1 to i32
    %c0_i32_0 = arith.constant 0 : i32
    %2 = arith.cmpi ne, %1, %c0_i32_0 : i32
    scf.if %2 {
      %cst_21 = arith.constant 0.000000e+00 : f32
      %28 = vector.broadcast %cst_21 : f32 to vector<2x32xf32>
      %c0_22 = arith.constant 0 : index
      %c0_23 = arith.constant 0 : index
      %29 = vector.load %arg6[%c0_22, %c0_23] : memref<2x32xf32, #tpu.memory_space<vmem>>, vector<2x32xf32>
      tpu.vector_store %arg6[%c0_22, %c0_23], %28 {strides = array<i32>} : memref<2x32xf32, #tpu.memory_space<vmem>>, vector<2x32xf32>,
    } else {
    }
    %c0 = arith.constant 0 : index
    %c0_1 = arith.constant 0 : index
    %3 = vector.load %arg1[%c0, %c0_1] : memref<8x24xbf16, #tpu.memory_space<vmem>>, vector<8x24xbf16>
    %4 = arith.extf %3 : vector<8x24xbf16> to vector<8x24xf32>
    %c0_2 = arith.constant 0 : index
    %c0_3 = arith.constant 0 : index
    %5 = vector.load %arg2[%c0_2, %c0_3] : memref<8x8xbf16, #tpu.memory_space<vmem>>, vector<8x8xbf16>
    %6 = arith.extf %5 : vector<8x8xbf16> to vector<8x8xf32>
    %c0_4 = arith.constant 0 : index
    %c0_5 = arith.constant 0 : index
    %7 = vector.load %arg3[%c0_4, %c0_5] : memref<24x32xf32, #tpu.memory_space<vmem>>, vector<24x32xf32>
    %cst = arith.constant dense<0.000000e+00> : vector<8x32xf32>
    %8 = tpu.matmul %4, %7, %cst {dimension_numbers = #tpu.dot_dimension_numbers<[1], [0], [0], [1], [0, 0, 1, 1], [], []>} : vector<8x24xf32>, vector<24x32xf32>, vector<8x32xf32> -> vector<8x32xf32>
    %c0_6 = arith.constant 0 : index
    %c0_7 = arith.constant 0 : index
    %9 = vector.load %arg4[%c0_6, %c0_7] : memref<8x32xf32, #tpu.memory_space<vmem>>, vector<8x32xf32>
    %cst_8 = arith.constant dense<0.000000e+00> : vector<8x32xf32>
    %10 = tpu.matmul %6, %9, %cst_8 {dimension_numbers = #tpu.dot_dimension_numbers<[1], [0], [0], [1], [0, 0, 1, 1], [], []>} : vector<8x8xf32>, vector<8x32xf32>, vector<8x32xf32> -> vector<8x32xf32>
    %11 = arith.addf %8, %10 : vector<8x32xf32>
    %c0_9 = arith.constant 0 : index
    %c0_10 = arith.constant 0 : index
    %12 = vector.load %arg5[%c0_9, %c0_10] : memref<2x32xf32, #tpu.memory_space<vmem>>, vector<1x32xf32>
    %13 = vector.broadcast %12 : vector<1x32xf32> to vector<8x32xf32>
    %14 = arith.addf %11, %13 : vector<8x32xf32>
    %cst_11 = arith.constant 0.000000e+00 : f32
    %15 = vector.broadcast %cst_11 : f32 to vector<8x32xf32>
    %16 = arith.maximumf %14, %15 : vector<8x32xf32>
    %c0_12 = arith.constant 0 : index
    %c0_13 = arith.constant 0 : index
    %17 = vector.load %arg6[%c0_12, %c0_13] : memref<2x32xf32, #tpu.memory_space<vmem>>, vector<1x32xf32>
    %cst_14 = arith.constant dense<0.000000e+00> : vector<32xf32>
    %18 = vector.multi_reduction <add>, %16, %cst_14 [0] : vector<8x32xf32> to vector<32xf32>
    %19 = vector.shape_cast %18 : vector<32xf32> to vector<1x32xf32>
    %20 = arith.addf %17, %19 : vector<1x32xf32>
    %c0_15 = arith.constant 0 : index
    %c0_16 = arith.constant 0 : index
    %21 = vector.load %arg6[%c0_15, %c0_16] : memref<2x32xf32, #tpu.memory_space<vmem>>, vector<1x32xf32>
    tpu.vector_store %arg6[%c0_15, %c0_16], %20 {strides = array<i32>} : memref<2x32xf32, #tpu.memory_space<vmem>>, vector<1x32xf32>,
    %c1 = arith.constant 1 : index
    %c0_17 = arith.constant 0 : index
    %22 = vector.load %arg6[%c1, %c0_17] : memref<2x32xf32, #tpu.memory_space<vmem>>, vector<1x32xf32>
    %23 = arith.mulf %16, %16 : vector<8x32xf32>
    %cst_18 = arith.constant dense<0.000000e+00> : vector<32xf32>
    %24 = vector.multi_reduction <add>, %23, %cst_18 [0] : vector<8x32xf32> to vector<32xf32>
    %25 = vector.shape_cast %24 : vector<32xf32> to vector<1x32xf32>
    %26 = arith.addf %22, %25 : vector<1x32xf32>
    %c1_19 = arith.constant 1 : index
    %c0_20 = arith.constant 0 : index
    %27 = vector.load %arg6[%c1_19, %c0_20] : memref<2x32xf32, #tpu.memory_space<vmem>>, vector<1x32xf32>
    tpu.vector_store %arg6[%c1_19, %c0_20], %26 {strides = array<i32>} : memref<2x32xf32, #tpu.memory_space<vmem>>, vector<1x32xf32>,
    return
  }
  func.func @transform_0(%arg0: i32) -> (i32, i32) {
    %c0_i32 = arith.constant 0 : i32
    %c0_i32_0 = arith.constant 0 : i32
    return %arg0, %c0_i32 : i32, i32
  }
  func.func @transform_1(%arg0: i32) -> (i32, i32) {
    %c0_i32 = arith.constant 0 : i32
    %c0_i32_0 = arith.constant 0 : i32
    return %arg0, %c0_i32 : i32, i32
  }
  func.func @transform_2(%arg0: i32) -> (i32, i32) {
    %c0_i32 = arith.constant 0 : i32
    %c0_i32_0 = arith.constant 0 : i32
    %c0_i32_1 = arith.constant 0 : i32
    return %c0_i32, %c0_i32_0 : i32, i32
  }
  func.func @transform_3(%arg0: i32) -> (i32, i32) {
    %c0_i32 = arith.constant 0 : i32
    %c0_i32_0 = arith.constant 0 : i32
    %c0_i32_1 = arith.constant 0 : i32
    return %c0_i32, %c0_i32_0 : i32, i32
  }
  func.func @transform_4(%arg0: i32) -> (i32, i32) {
    %c0_i32 = arith.constant 0 : i32
    %c0_i32_0 = arith.constant 0 : i32
    %c0_i32_1 = arith.constant 0 : i32
    return %c0_i32, %c0_i32_0 : i32, i32
  }
  func.func @transform_5(%arg0: i32) -> (i32, i32) {
    %c0_i32 = arith.constant 0 : i32
    %c0_i32_0 = arith.constant 0 : i32
    %c0_i32_1 = arith.constant 0 : i32
    return %c0_i32, %c0_i32_0 : i32, i32
  }
}

module attributes {stable_mosaic.version = 11 : i64} {
  func.func @apply_kernel(%arg0: i32, %arg1: memref<8x24xbf16, #tpu.memory_space<vmem>>, %arg2: memref<8x8xbf16, #tpu.memory_space<vmem>>, %arg3: memref<24x32xf32, #tpu.memory_space<vmem>>, %arg4: memref<8x32xf32, #tpu.memory_space<vmem>>, %arg5: memref<32x14xf32, #tpu.memory_space<vmem>>, %arg6: memref<2x32xf32, #tpu.memory_space<vmem>>, %arg7: memref<2x32xf32, #tpu.memory_space<vmem>>, %arg8: memref<8x14xf32, #tpu.memory_space<vmem>>) attributes {dimension_semantics = [#tpu.dimension_semantics<parallel>], iteration_bounds = array<i64: 1>, scalar_prefetch = 0 : i64, scratch_operands = 0 : i64, tpu.core_type = #tpu.core_type<tc>, window_params = [{transform_indices = @transform_0, window_bounds = array<i64: 8, 24>}, {transform_indices = @transform_1, window_bounds = array<i64: 8, 8>}, {pipeline_mode = #tpu.pipeline_mode<synchronous>, transform_indices = @transform_2, window_bounds = array<i64: 24, 32>}, {pipeline_mode = #tpu.pipeline_mode<synchronous>, transform_indices = @transform_3, window_bounds = array<i64: 8, 32>}, {pipeline_mode = #tpu.pipeline_mode<synchronous>, transform_indices = @transform_4, window_bounds = array<i64: 32, 14>}, {pipeline_mode = #tpu.pipeline_mode<synchronous>, transform_indices = @transform_5, window_bounds = array<i64: 2, 32>}, {pipeline_mode = #tpu.pipeline_mode<synchronous>, transform_indices = @transform_6, window_bounds = array<i64: 2, 32>}, {transform_indices = @transform_7, window_bounds = array<i64: 8, 14>}]} {
    %c0 = arith.constant 0 : index
    %c0_0 = arith.constant 0 : index
    %0 = vector.load %arg1[%c0, %c0_0] : memref<8x24xbf16, #tpu.memory_space<vmem>>, vector<8x24xbf16>
    %1 = arith.extf %0 : vector<8x24xbf16> to vector<8x24xf32>
    %c0_1 = arith.constant 0 : index
    %c0_2 = arith.constant 0 : index
    %2 = vector.load %arg2[%c0_1, %c0_2] : memref<8x8xbf16, #tpu.memory_space<vmem>>, vector<8x8xbf16>
    %3 = arith.extf %2 : vector<8x8xbf16> to vector<8x8xf32>
    %c0_3 = arith.constant 0 : index
    %c0_4 = arith.constant 0 : index
    %4 = vector.load %arg3[%c0_3, %c0_4] : memref<24x32xf32, #tpu.memory_space<vmem>>, vector<24x32xf32>
    %cst = arith.constant dense<0.000000e+00> : vector<8x32xf32>
    %5 = tpu.matmul %1, %4, %cst {dimension_numbers = #tpu.dot_dimension_numbers<[1], [0], [0], [1], [0, 0, 1, 1], [], []>} : vector<8x24xf32>, vector<24x32xf32>, vector<8x32xf32> -> vector<8x32xf32>
    %c0_5 = arith.constant 0 : index
    %c0_6 = arith.constant 0 : index
    %6 = vector.load %arg4[%c0_5, %c0_6] : memref<8x32xf32, #tpu.memory_space<vmem>>, vector<8x32xf32>
    %cst_7 = arith.constant dense<0.000000e+00> : vector<8x32xf32>
    %7 = tpu.matmul %3, %6, %cst_7 {dimension_numbers = #tpu.dot_dimension_numbers<[1], [0], [0], [1], [0, 0, 1, 1], [], []>} : vector<8x8xf32>, vector<8x32xf32>, vector<8x32xf32> -> vector<8x32xf32>
    %8 = arith.addf %5, %7 : vector<8x32xf32>
    %c0_8 = arith.constant 0 : index
    %c0_9 = arith.constant 0 : index
    %9 = vector.load %arg6[%c0_8, %c0_9] : memref<2x32xf32, #tpu.memory_space<vmem>>, vector<1x32xf32>
    %10 = vector.broadcast %9 : vector<1x32xf32> to vector<8x32xf32>
    %11 = arith.addf %8, %10 : vector<8x32xf32>
    %cst_10 = arith.constant 0.000000e+00 : f32
    %12 = vector.broadcast %cst_10 : f32 to vector<8x32xf32>
    %13 = arith.maximumf %11, %12 : vector<8x32xf32>
    %c0_11 = arith.constant 0 : index
    %c0_12 = arith.constant 0 : index
    %14 = vector.load %arg7[%c0_11, %c0_12] : memref<2x32xf32, #tpu.memory_space<vmem>>, vector<1x32xf32>
    %15 = vector.broadcast %14 : vector<1x32xf32> to vector<8x32xf32>
    %16 = arith.mulf %13, %15 : vector<8x32xf32>
    %c1 = arith.constant 1 : index
    %c0_13 = arith.constant 0 : index
    %17 = vector.load %arg7[%c1, %c0_13] : memref<2x32xf32, #tpu.memory_space<vmem>>, vector<1x32xf32>
    %18 = vector.broadcast %17 : vector<1x32xf32> to vector<8x32xf32>
    %19 = arith.addf %16, %18 : vector<8x32xf32>
    %c0_14 = arith.constant 0 : index
    %c0_15 = arith.constant 0 : index
    %20 = vector.load %arg5[%c0_14, %c0_15] : memref<32x14xf32, #tpu.memory_space<vmem>>, vector<32x14xf32>
    %cst_16 = arith.constant dense<0.000000e+00> : vector<8x14xf32>
    %21 = tpu.matmul %19, %20, %cst_16 {dimension_numbers = #tpu.dot_dimension_numbers<[1], [0], [0], [1], [0, 0, 1, 1], [], []>} : vector<8x32xf32>, vector<32x14xf32>, vector<8x14xf32> -> vector<8x14xf32>
    %c1_17 = arith.constant 1 : index
    %c0_18 = arith.constant 0 : index
    %22 = vector.load %arg6[%c1_17, %c0_18] : memref<2x32xf32, #tpu.memory_space<vmem>>, vector<1x14xf32>
    %23 = vector.broadcast %22 : vector<1x14xf32> to vector<8x14xf32>
    %24 = arith.addf %21, %23 : vector<8x14xf32>
    %cst_19 = arith.constant 1.000000e+00 : f32
    %25 = vector.broadcast %cst_19 : f32 to vector<8x8xf32>
    %26 = arith.cmpf oge, %3, %25 : vector<8x8xf32>
    %27 = vector.extract_strided_slice %24 {offsets = [0, 0], sizes = [8, 8], strides = [1, 1]} : vector<8x14xf32> to vector<8x8xf32>
    %cst_20 = arith.constant 0xFF800000 : f32
    %28 = vector.broadcast %cst_20 : f32 to vector<8x8xf32>
    %29 = arith.select %26, %28, %27 : vector<8x8xi1>, vector<8x8xf32>
    %c0_21 = arith.constant 0 : index
    %c0_22 = arith.constant 0 : index
    %30 = vector.load %arg8[%c0_21, %c0_22] : memref<8x14xf32, #tpu.memory_space<vmem>>, vector<8x8xf32>
    tpu.vector_store %arg8[%c0_21, %c0_22], %29 {strides = array<i32>} : memref<8x14xf32, #tpu.memory_space<vmem>>, vector<8x8xf32>,
    %31 = vector.extract_strided_slice %24 {offsets = [0, 8], sizes = [8, 6], strides = [1, 1]} : vector<8x14xf32> to vector<8x6xf32>
    %c0_23 = arith.constant 0 : index
    %c8 = arith.constant 8 : index
    %32 = vector.load %arg8[%c0_23, %c8] : memref<8x14xf32, #tpu.memory_space<vmem>>, vector<8x6xf32>
    tpu.vector_store %arg8[%c0_23, %c8], %31 {strides = array<i32>} : memref<8x14xf32, #tpu.memory_space<vmem>>, vector<8x6xf32>,
    return
  }
  func.func @transform_0(%arg0: i32) -> (i32, i32) {
    %c0_i32 = arith.constant 0 : i32
    %c0_i32_0 = arith.constant 0 : i32
    return %arg0, %c0_i32 : i32, i32
  }
  func.func @transform_1(%arg0: i32) -> (i32, i32) {
    %c0_i32 = arith.constant 0 : i32
    %c0_i32_0 = arith.constant 0 : i32
    return %arg0, %c0_i32 : i32, i32
  }
  func.func @transform_2(%arg0: i32) -> (i32, i32) {
    %c0_i32 = arith.constant 0 : i32
    %c0_i32_0 = arith.constant 0 : i32
    %c0_i32_1 = arith.constant 0 : i32
    return %c0_i32, %c0_i32_0 : i32, i32
  }
  func.func @transform_3(%arg0: i32) -> (i32, i32) {
    %c0_i32 = arith.constant 0 : i32
    %c0_i32_0 = arith.constant 0 : i32
    %c0_i32_1 = arith.constant 0 : i32
    return %c0_i32, %c0_i32_0 : i32, i32
  }
  func.func @transform_4(%arg0: i32) -> (i32, i32) {
    %c0_i32 = arith.constant 0 : i32
    %c0_i32_0 = arith.constant 0 : i32
    %c0_i32_1 = arith.constant 0 : i32
    return %c0_i32, %c0_i32_0 : i32, i32
  }
  func.func @transform_5(%arg0: i32) -> (i32, i32) {
    %c0_i32 = arith.constant 0 : i32
    %c0_i32_0 = arith.constant 0 : i32
    %c0_i32_1 = arith.constant 0 : i32
    return %c0_i32, %c0_i32_0 : i32, i32
  }
  func.func @transform_6(%arg0: i32) -> (i32, i32) {
    %c0_i32 = arith.constant 0 : i32
    %c0_i32_0 = arith.constant 0 : i32
    %c0_i32_1 = arith.constant 0 : i32
    return %c0_i32, %c0_i32_0 : i32, i32
  }
  func.func @transform_7(%arg0: i32) -> (i32, i32) {
    %c0_i32 = arith.constant 0 : i32
    %c0_i32_0 = arith.constant 0 : i32
    return %arg0, %c0_i32 : i32, i32
  }
}

</mosaic_0001>

<bundles_post_ra>
// kernel: net_forward.2
= control target key start
LH: loop header
LB: loop body
LE: loop exit
PB: predicated region body
PF: predicated region fallthrough
CT: control target
= control target key end

     0   :  { %vm24_vm0 = vcmask 254976   ;;  %v245_v0 = vmov 0.0|0.0   ;;  %v246_v3 = vmov 0.0   ;;  %vm247_vm1 = vmmov 0   ;;  %s314_s2 = inlined_call_operand.vmem [shape: f32[24,32], index: 2, kind: input, shape index: {}]   ;;  %s315_s5 = inlined_call_operand.vmem [shape: f32[2,32], index: 5, kind: output, shape index: {}]   ;;  %s316_s3 = inlined_call_operand.vmem [shape: f32[8,32], index: 3, kind: input, shape index: {}]   ;;  %s317_s1 = inlined_call_operand.vmem [shape: bf16[8,8], index: 1, kind: input, shape index: {}]   ;;  %s318_s0 = inlined_call_operand.vmem [shape: bf16[8,24], index: 0, kind: input, shape index: {}]   ;;  %s319_s4 = inlined_call_operand.vmem [shape: f32[2,32], index: 4, kind: input, shape index: {}]  }
   0x1   :  { %239 = vmatprep.subr.bf16.mxu1 %v245_v0  ;;  %v30_v1 = vld [vmem:[%s314_s2] sm:$0xff]  ;;  %v31_v2 = vld [vmem:[%s314_s2 + $0x8] sm:$0xff]  ;;  %25 = vst.msk [vmem:[%s315_s5] sm:$0x3] %vm24_vm0, %v246_v3  ;;  %225 = vmatprep.subr.mxu0 %v246_v3  ;;  %vm34_vm2 = vcmask 64512   ;;  %v32_v9 = vld [vmem:[%s314_s2 + $0x10] sm:$0xff] }
   0x2   :  { %v33_v4 = vld [vmem:[%s316_s3] sm:$0xff]  ;;  %v240_v5 = vpack.c.bf16 %v31_v2, %v30_v1  ;;  %227 = vmatprep.mubr.msk.f32.mxu0 %vm247_vm1, %v246_v3  ;;  %236 = vmatprep.mubr.msk.f32.mxu1 %vm247_vm1, %v246_v3  ;;  %vm108_vm3 = vcmask 195584   ;;  %vm190_vm4 = vcmask 261120   ;;  %vm199_vm5 = vcmask 253952  }
   0x3   :  { %226 = vmatpush3.msra.mxu0 %v33_v4  ;;  %v28_v6 = vld [vmem:[%s317_s1] sm:$0xf] }
   0x4   :  { %v26_v7 = vld [vmem:[%s318_s0] sm:$0xf]  ;;  %v29_v8 = vunpack.c.l.bf16 %v28_v6  ;;  %241 = vmatpush3.bf16.msra.mxu1 %v240_v5 }
   0x5   :  { %234 = vmatprep.subr.mxu1 %v246_v3  ;;  %v27_v10 = vunpack.c.l.bf16 %v26_v7  ;;  %v218_v14 = vld [vmem:[%s319_s4] ss:$0 sm:$0xff] }
   0x6   :  { %228 = vmatmul.mubr.msk.f32.vlgmr.msra.gmra.mrb[0].mxu0 %vm34_vm2, %v29_v8 }
   0x8   :  { %235 = vmatpush3.msra.mxu1 %v32_v9  ;;  %v189_v31 = vld [vmem:[%s315_s5] sm:$0x1]  ;;  %v201_v34 = vld [vmem:[%s315_s5 + $0x1] sm:$0x1] }
   0x9   :  { %237 = vmatmul.mubr.msk.f32.vlgmr.msra.gmra.mrb[0].mxu1 %vm108_vm3, %v27_v10 }
  0xd9   :  { %v104_v11 = vpop.f32.mrb[0].mxu0 }
  0xda   :  { %v229_v12 = vpop.f32.mrb[1].mxu0 }
  0xdc   :  { %v178_v13 = vpop.f32.mrb[0].mxu1 }
  0xdd   :  { %v179_v15 = vadd.f32 %v178_v13, %v104_v11  ;;  %v238_v16 = vpop.f32.mrb[1].mxu1 }
  0xdf   :  { %v187_v17 = vadd.f32 %v218_v14, %v179_v15 }
  0xe1   :  { %v188_v18 = vmax.f32 %v187_v17, 0.0 }
  0xe3   :  { %v191_v19 = vsel %vm190_vm4, %v188_v18, 0.0  ;;  %v202_v20 = vmul.f32 %v188_v18, %v188_v18 }
  0xe4   :  { %v192_v21 = vrot.slane %v191_v19, 4 }
  0xe5   :  { %v203_v22 = vsel %vm190_vm4, %v202_v20, 0.0 }
  0xe6   :  { %v193_v23 = vadd.f32 %v192_v21, %v191_v19  ;;  %v204_v24 = vrot.slane %v203_v22, 4 }
  0xe8   :  { %v194_v25 = vrot.slane %v193_v23, 2  ;;  %v205_v26 = vadd.f32 %v204_v24, %v203_v22 }
  0xea   :  { %v195_v27 = vadd.f32 %v194_v25, %v193_v23  ;;  %v206_v28 = vrot.slane %v205_v26, 2 }
  0xec   :  { %v196_v29 = vrot.slane %v195_v27, 1  ;;  %v207_v30 = vadd.f32 %v206_v28, %v205_v26 }
  0xee   :  { %v197_v32 = vadd.f32 %v196_v29, %v195_v27  ;;  %v208_v33 = vrot.slane %v207_v30, 1 }
  0xf0   :  { %v198_v35 = vadd.f32 %v197_v32, %v189_v31  ;;  %v209_v36 = vadd.f32 %v208_v33, %v207_v30 }
  0xf2   :  { %200 = vst.msk [vmem:[%s315_s5] sm:$0x1] %vm199_vm5, %v198_v35  ;;  %v210_v37 = vadd.f32 %v209_v36, %v201_v34 }
  0xf4   :  { %211 = vst.msk [vmem:[%s315_s5 + $0x1] sm:$0x1] %vm199_vm5, %v210_v37 }

// kernel: net_forward.3
= control target key start
LH: loop header
LB: loop body
LE: loop exit
PB: predicated region body
PF: predicated region fallthrough
CT: control target
= control target key end

     0   :  { %v348_v0 = vmov 0.0   ;;  %vm349_vm0 = vmmov 0   ;;  %vm34_vm1 = vcmask 64512   ;;  %v350_v6 = vmov 0.0|0.0   ;;  %s444_s3 = inlined_call_operand.vmem [shape: f32[8,32], index: 3, kind: input, shape index: {}]   ;;  %s445_s1 = inlined_call_operand.vmem [shape: bf16[8,8], index: 1, kind: input, shape index: {}]   ;;  %s446_s2 = inlined_call_operand.vmem [shape: f32[24,32], index: 2, kind: input, shape index: {}]   ;;  %s447_s0 = inlined_call_operand.vmem [shape: bf16[8,24], index: 0, kind: input, shape index: {}]   ;;  %s448_s4 = inlined_call_operand.vmem [shape: f32[32,14], index: 4, kind: input, shape index: {}]   ;;  %s449_s5 = inlined_call_operand.vmem [shape: f32[2,32], index: 5, kind: input, shape index: {}]   ;;  %s450_s6 = inlined_call_operand.vmem [shape: f32[2,32], index: 6, kind: input, shape index: {}]   ;;  %s451_s7 = inlined_call_operand.vmem [shape: f32[8,14], index: 7, kind: output, shape index: {}]  }
   0x1   :  { %311 = vmatprep.subr.mxu1 %v348_v0  ;;  %v33_v1 = vld [vmem:[%s444_s3] sm:$0xff]  ;;  %313 = vmatprep.mubr.msk.f32.mxu1 %vm349_vm0, %v348_v0  ;;  %v31_v5 = vld [vmem:[%s446_s2 + $0x8] sm:$0xff]  ;;  %v32_v9 = vld [vmem:[%s446_s2 + $0x10] sm:$0xff]  ;;  %vm108_vm2 = vcmask 195584   ;;  %vm210_vm3 = vcmask 261120   ;;  %vm287_vm5 = vcmask 113728  }
   0x2   :  { %v28_v2 = vld [vmem:[%s445_s1] sm:$0xf]  ;;  %312 = vmatpush3.msra.mxu1 %v33_v1  ;;  %339 = vmatprep.subr.bf16.mxu0 %v350_v6  ;;  %v202_v12 = vld [vmem:[%s448_s4 + $0x8] sm:$0xff]  ;;  %v203_v14 = vld [vmem:[%s448_s4 + $0x10] sm:$0xff] }
   0x3   :  { %v30_v3 = vld [vmem:[%s446_s2] sm:$0xff]  ;;  %v29_v4 = vunpack.c.l.bf16 %v28_v2  ;;  %336 = vmatprep.subr.bf16.mxu1 %v350_v6  ;;  %333 = vmatprep.mubr.msk.f32.mxu0 %vm349_vm0, %v348_v0  ;;  %v204_v15 = vld [vmem:[%s448_s4 + $0x18] sm:$0xff] }
   0x4   :  { %v337_v7 = vpack.c.bf16 %v31_v5, %v30_v3  ;;  %v26_v8 = vld [vmem:[%s447_s0] sm:$0xf]  ;;  %v343_v16 = vpack.c.bf16 %v204_v15, %v203_v14 }
   0x5   :  { %314 = vmatmul.mubr.msk.f32.vlgmr.msra.gmra.mrb[0].mxu1 %vm34_vm1, %v29_v4  ;;  %v27_v10 = vunpack.c.l.bf16 %v26_v8  ;;  %v201_v11 = vld [vmem:[%s448_s4] sm:$0xff]  ;;  %vm284_vm4 = vcmp.ge.f32.partialorder %v29_v4, 1.0 }
   0x6   :  { %338 = vmatpush3.bf16.msra.mxu1 %v337_v7  ;;  %322 = vmatprep.mubr.msk.f32.mxu1 %vm349_vm0, %v348_v0  ;;  %v340_v13 = vpack.c.bf16 %v202_v12, %v201_v11  ;;  %v295_v20 = vld [vmem:[%s449_s5] ss:$0 sm:$0xff]  ;;  %v297_v26 = vld [vmem:[%s450_s6 + $0x1] ss:$0 sm:$0xff] }
   0x7   :  { %320 = vmatprep.subr.mxu1 %v348_v0  ;;  %v296_v24 = vld [vmem:[%s450_s6] ss:$0 sm:$0xff]  ;;  %v298_v29 = vld [vmem:[%s449_s5 + $0x1] ss:$0 sm:$0xff] }
   0x8   :  { %341 = vmatpush3.bf16.msra.mxu0 %v340_v13 }
   0x9   :  { %342 = vmatprep.subr.bf16.mxu0 %v350_v6 }
   0xa   :  { %321 = vmatpush3.msra.mxu1 %v32_v9 }
   0xb   :  { %323 = vmatmul.mubr.msk.f32.vlgmr.msra.gmra.mrb[2].mxu1 %vm108_vm2, %v27_v10 }
   0xc   :  { %344 = vmatpush3.bf16.msra.mxu0 %v343_v16 }
  0xd8   :  { %v104_v17 = vpop.f32.mrb[0].mxu1 }
  0xd9   :  { %v315_v18 = vpop.f32.mrb[1].mxu1 }
  0xde   :  { %v178_v19 = vpop.f32.mrb[2].mxu1 }
  0xdf   :  { %v179_v21 = vadd.f32 %v178_v19, %v104_v17  ;;  %v324_v22 = vpop.f32.mrb[3].mxu1 }
  0xe1   :  { %v187_v23 = vadd.f32 %v295_v20, %v179_v21 }
  0xe3   :  { %v188_v25 = vmax.f32 %v187_v23, 0.0 }
  0xe5   :  { %v194_v27 = vmul.f32 %v296_v24, %v188_v25 }
  0xe7   :  { %v200_v28 = vadd.f32 %v297_v26, %v194_v27 }
  0xe9   :  { %334 = vmatmul.mubr.msk.f32.vlgmr.msra.gmra.mrb[0].mxu0 %vm210_vm3, %v200_v28 }
 0x1bc   :  { %v280_v30 = vpop.f32.mrb[0].mxu0 }
 0x1bd   :  { %v281_v31 = vadd.f32 %v298_v29, %v280_v30  ;;  %v335_v32 = vpop.f32.mrb[1].mxu0 }
 0x1bf   :  { %v285_v33 = vsel %vm284_vm4, -inf, %v281_v31 }
 0x1c0   :  { %286 = vst.msk [vmem:[%s451_s7] sm:$0xff] %vm34_vm1, %v285_v33 }
 0x1c1   :  { %288 = vst.msk [vmem:[%s451_s7] sm:$0xff] %vm287_vm5, %v281_v31 }

</bundles_post_ra>
